<compile_context>
chip_gen: v6e
topology: v6e:2x2x1
jax: 0.10.0
libtpu: 0.0.40
codegen_flags: <defaults>
</compile_context>

<pallas_src>
import functools

import jax
import jax.numpy as jnp
from jax.experimental import pallas as pl
from jax.experimental.pallas import tpu as pltpu

H1, H2 = 128, 64          # fc1 / fc2 widths (fixed by the PyTorch module)
TK_TARGET = 2048          # reduction (vocab) tile for the streaming path


def _round_up(x, m):
    return ((x + m - 1) // m) * m


def _pad2d(a, rows, cols):
    r, c = a.shape
    if r == rows and c == cols:
        return a
    return jnp.pad(a, ((0, rows - r), (0, cols - c)))


def _vmem_limit_bytes():
    cap = 128 << 20
    try:
        info = pltpu.get_tpu_info()
        cap = int(getattr(info, "vmem_capacity_bytes", cap))
    except Exception:
        pass
    if cap <= (64 << 20):                       # v7x-class: 64 MiB / TC
        return min((cap * 3) // 4, 48 << 20)
    return min((cap * 3) // 4, 100 << 20)       # v5e / v6e: 128 MiB


def _k_tiling(K):
    """Return (K_pad, TK): one K step for small vocabs, else TK_TARGET tiles."""
    k128 = _round_up(K, 128)
    if k128 <= TK_TARGET:
        return k128, k128
    return _round_up(K, TK_TARGET), TK_TARGET


def _mlp_kernel(x_ref, w1_ref, b1_ref, w2_ref, b2_ref, w3_ref, b3_ref,
                o_ref, acc_ref, *, w1_resident, tk):
    k = pl.program_id(1)

    @pl.when(k == 0)
    def _init():
        # Fold the fc1 bias into the accumulator init.
        acc_ref[...] = jnp.broadcast_to(b1_ref[...], acc_ref.shape)

    if w1_resident:
        # w1 lives fully in VMEM (fetched once); slice the current K tile.
        start = pl.multiple_of(k * tk, 128)
        w1_tile = w1_ref[pl.ds(start, tk), :]
    else:
        w1_tile = w1_ref[...]

    # Partial fc1 over this K tile: cast x to bf16 in-kernel (no wrapper pass),
    # bf16 x bf16 -> f32 accumulate on the MXU.
    acc_ref[...] += jnp.dot(x_ref[...].astype(jnp.bfloat16), w1_tile,
                            preferred_element_type=jnp.float32)

    @pl.when(k == pl.num_programs(1) - 1)
    def _finalize():
        # relu (eval-mode dropout = identity)
        h1 = jnp.maximum(acc_ref[...], 0.0).astype(jnp.bfloat16)
        # fc2 + relu (tiny; bf16 operands, f32 accumulate)
        h2 = jnp.dot(h1, w2_ref[...].astype(jnp.bfloat16),
                     preferred_element_type=jnp.float32) + b2_ref[...]
        h2 = jnp.maximum(h2, 0.0).astype(jnp.bfloat16)
        # output + sigmoid (lane-dense padded to 128 genres)
        logits = jnp.dot(h2, w3_ref[...].astype(jnp.bfloat16),
                         preferred_element_type=jnp.float32) + b3_ref[...]
        o_ref[...] = jax.nn.sigmoid(logits).astype(o_ref.dtype)


def init_params(key, input_dim, num_genres):
    """PyTorch nn.Linear-style init (U[-1/sqrt(fan_in), +]); (in, out) layout, f32."""
    def linear(k, fan_in, fan_out):
        kw, kb = jax.random.split(k)
        bound = 1.0 / jnp.sqrt(float(fan_in))
        w = jax.random.uniform(kw, (fan_in, fan_out), jnp.float32, -bound, bound)
        b = jax.random.uniform(kb, (1, fan_out), jnp.float32, -bound, bound)
        return w, b

    k1, k2, k3 = jax.random.split(key, 3)
    w1, b1 = linear(k1, input_dim, H1)
    w2, b2 = linear(k2, H1, H2)
    w3, b3 = linear(k3, H2, num_genres)
    return {"w1": w1, "b1": b1, "w2": w2, "b2": b2, "w3": w3, "b3": b3}


def prepare_params(params):
    """One-time pad/cast of the weights (hoisted out of the per-call forward)."""
    w1, b1 = params["w1"], params["b1"]
    w2, b2 = params["w2"], params["b2"]
    w3, b3 = params["w3"], params["b3"]
    K = w1.shape[0]
    G = w3.shape[1]
    K_pad, TK = _k_tiling(K)
    G_pad = _round_up(G, 128)
    return {
        "w1": _pad2d(w1.astype(jnp.bfloat16), K_pad, H1),   # bf16 halves w1 HBM traffic
        "b1": b1.astype(jnp.float32),
        "w2": w2.astype(jnp.float32),
        "b2": b2.astype(jnp.float32),
        "w3": _pad2d(w3.astype(jnp.float32), H2, G_pad),
        "b3": _pad2d(b3.astype(jnp.float32), 1, G_pad),
        "K": K, "G": G, "K_pad": K_pad, "TK": TK, "G_pad": G_pad,
    }


def categorization_forward(x, prepared):
    """x: (B, input_dim) float32.  prepared: output of prepare_params."""
    w1, b1 = prepared["w1"], prepared["b1"]
    w2, b2 = prepared["w2"], prepared["b2"]
    w3, b3 = prepared["w3"], prepared["b3"]
    K, G = prepared["K"], prepared["G"]
    K_pad, TK, G_pad = prepared["K_pad"], prepared["TK"], prepared["G_pad"]

    B = x.shape[0]
    assert x.shape[1] == K

    # Batch tile: 128 (MXU-aligned) when available; bf16 packs 2 rows/sublane,
    # so small batches round to 16 rather than 8.
    TM = 128 if B >= 128 else _round_up(B, 16)
    B_pad = _round_up(B, TM)
    n_btiles = B_pad // TM
    n_ktiles = K_pad // TK

    # Only the activation gets (cheap) per-call padding; weights are pre-padded.
    x_p = _pad2d(x, B_pad, K_pad)

    vmem_limit = _vmem_limit_bytes()
    # Residency budget: resident w1 (count 2x for buffering) + double-buffered
    # f32 x tiles + output tiles + accumulator + small resident weights.
    w1_bytes = K_pad * H1 * 2
    x_tile_bytes = 2 * TM * TK * 4
    out_tile_bytes = 2 * TM * G_pad * 4
    small_bytes = 2 * 4 * (H1 * H2 + H2 * G_pad + H1 + H2 + G_pad) + TM * H1 * 4
    w1_resident = (
        n_btiles > 1
        and (2 * w1_bytes + x_tile_bytes + out_tile_bytes + small_bytes)
            <= (vmem_limit * 3) // 4
    )

    if w1_resident:
        w1_spec = pl.BlockSpec((K_pad, H1), lambda i, k: (0, 0))   # fetched once
    else:
        w1_spec = pl.BlockSpec((TK, H1), lambda i, k: (k, 0))      # streamed

    kernel = functools.partial(_mlp_kernel, w1_resident=w1_resident, tk=TK)

    flops = 2 * B_pad * (K_pad * H1 + H1 * H2 + H2 * G_pad)
    w1_reads = 1 if w1_resident else n_btiles
    bytes_accessed = (
        x_p.size * 4
        + w1.size * 2 * w1_reads
        + (b1.size + w2.size + b2.size + w3.size + b3.size) * 4
        + B_pad * G_pad * 4
    )
    cost = pl.CostEstimate(flops=flops,
                           transcendentals=B_pad * G_pad,
                           bytes_accessed=bytes_accessed)

    out_padded = pl.pallas_call(
        kernel,
        out_shape=jax.ShapeDtypeStruct((B_pad, G_pad), jnp.float32),
        grid=(n_btiles, n_ktiles),
        in_specs=[
            pl.BlockSpec((TM, TK), lambda i, k: (i, k)),      # x tile (f32)
            w1_spec,                                          # w1 (bf16)
            pl.BlockSpec((1, H1), lambda i, k: (0, 0)),       # b1 (resident)
            pl.BlockSpec((H1, H2), lambda i, k: (0, 0)),      # w2 (resident)
            pl.BlockSpec((1, H2), lambda i, k: (0, 0)),       # b2 (resident)
            pl.BlockSpec((H2, G_pad), lambda i, k: (0, 0)),   # w3 (resident)
            pl.BlockSpec((1, G_pad), lambda i, k: (0, 0)),    # b3 (resident)
        ],
        out_specs=pl.BlockSpec((TM, G_pad), lambda i, k: (i, 0)),
        scratch_shapes=[pltpu.VMEM((TM, H1), jnp.float32)],   # fc1 accumulator
        compiler_params=pltpu.CompilerParams(
            dimension_semantics=("parallel", "arbitrary"),
            vmem_limit_bytes=vmem_limit,
        ),
        cost_estimate=cost,
    )(x_p, w1, b1, w2, b2, w3, b3)

    return out_padded[:B, :G]


def reference_forward(x, params):
    """Pure-JAX reference with the same numerics as the kernel (bf16 matmul
    operands, f32 accumulation, f32 bias/activations)."""
    f32 = jnp.float32
    h = jnp.dot(x.astype(jnp.bfloat16), params["w1"].astype(jnp.bfloat16),
                preferred_element_type=f32) + params["b1"]
    h = jnp.maximum(h, 0.0)
    h = jnp.dot(h.astype(jnp.bfloat16), params["w2"].astype(jnp.bfloat16),
                preferred_element_type=f32) + params["b2"]
    h = jnp.maximum(h, 0.0)
    logits = jnp.dot(h.astype(jnp.bfloat16), params["w3"].astype(jnp.bfloat16),
                     preferred_element_type=f32) + params["b3"]
    return jax.nn.sigmoid(logits)


if __name__ == "__main__":
    key = jax.random.PRNGKey(0)

    # --- Test 1: small shapes (single batch tile -> streaming-w1 path) -----
    k1, k2, key = jax.random.split(key, 3)
    B, D, G = 8, 256, 16
    x = jax.random.normal(k1, (B, D), jnp.float32)
    params = init_params(k2, D, G)
    prepared = prepare_params(params)

    out = jax.block_until_ready(categorization_forward(x, prepared))
    ref = reference_forward(x, params)
    assert out.shape == (B, G)
    assert jnp.allclose(out, ref, atol=2e-3, rtol=2e-3), (
        float(jnp.max(jnp.abs(out - ref))))

    # --- Test 2: multi batch tile + multi K tile -> VMEM-resident-w1 path ---
    k1, k2, key = jax.random.split(key, 3)
    B2, D2, G2 = 256, 4096, 10
    x2 = jax.random.normal(k1, (B2, D2), jnp.float32)
    params2 = init_params(k2, D2, G2)
    prepared2 = prepare_params(params2)

    out2 = jax.block_until_ready(categorization_forward(x2, prepared2))
    ref2 = reference_forward(x2, params2)
    assert out2.shape == (B2, G2)
    assert jnp.allclose(out2, ref2, atol=2e-3, rtol=2e-3), (
        float(jnp.max(jnp.abs(out2 - ref2))))

    print("KERNEL_OK")
</pallas_src>

<mosaic_0001>
module attributes {stable_mosaic.version = 11 : i64} {
  func.func @_mlp_kernel(%arg0: i32, %arg1: i32, %arg2: memref<16x256xf32, #tpu.memory_space<vmem>>, %arg3: memref<256x128xbf16, #tpu.memory_space<vmem>>, %arg4: memref<1x128xf32, #tpu.memory_space<vmem>>, %arg5: memref<128x64xf32, #tpu.memory_space<vmem>>, %arg6: memref<1x64xf32, #tpu.memory_space<vmem>>, %arg7: memref<64x128xf32, #tpu.memory_space<vmem>>, %arg8: memref<1x128xf32, #tpu.memory_space<vmem>>, %arg9: memref<16x128xf32, #tpu.memory_space<vmem>>, %arg10: memref<16x128xf32, #tpu.memory_space<vmem>>) attributes {dimension_semantics = [#tpu.dimension_semantics<parallel>, #tpu.dimension_semantics<arbitrary>], iteration_bounds = array<i64: 1, 1>, scalar_prefetch = 0 : i64, scratch_operands = 1 : i64, tpu.core_type = #tpu.core_type<tc>, window_params = [{transform_indices = @transform_0, window_bounds = array<i64: 16, 256>}, {transform_indices = @transform_1, window_bounds = array<i64: 256, 128>}, {pipeline_mode = #tpu.pipeline_mode<synchronous>, transform_indices = @transform_2, window_bounds = array<i64: 1, 128>}, {pipeline_mode = #tpu.pipeline_mode<synchronous>, transform_indices = @transform_3, window_bounds = array<i64: 128, 64>}, {pipeline_mode = #tpu.pipeline_mode<synchronous>, transform_indices = @transform_4, window_bounds = array<i64: 1, 64>}, {pipeline_mode = #tpu.pipeline_mode<synchronous>, transform_indices = @transform_5, window_bounds = array<i64: 64, 128>}, {pipeline_mode = #tpu.pipeline_mode<synchronous>, transform_indices = @transform_6, window_bounds = array<i64: 1, 128>}, {transform_indices = @transform_7, window_bounds = array<i64: 16, 128>}]} {
    %c0_i32 = arith.constant 0 : i32
    %0 = arith.cmpi eq, %arg1, %c0_i32 : i32
    %1 = arith.extui %0 : i1 to i32
    %c0_i32_0 = arith.constant 0 : i32
    %2 = arith.cmpi ne, %1, %c0_i32_0 : i32
    scf.if %2 {
      %c0_10 = arith.constant 0 : index
      %c0_11 = arith.constant 0 : index
      %13 = vector.load %arg4[%c0_10, %c0_11] : memref<1x128xf32, #tpu.memory_space<vmem>>, vector<1x128xf32>
      %14 = vector.shape_cast %13 : vector<1x128xf32> to vector<1x128xf32>
      %15 = vector.broadcast %14 : vector<1x128xf32> to vector<16x128xf32>
      %c0_12 = arith.constant 0 : index
      %c0_13 = arith.constant 0 : index
      %16 = vector.load %arg10[%c0_12, %c0_13] : memref<16x128xf32, #tpu.memory_space<vmem>>, vector<16x128xf32>
      tpu.vector_store %arg10[%c0_12, %c0_13], %15 {strides = array<i32>} : memref<16x128xf32, #tpu.memory_space<vmem>>, vector<16x128xf32>,
    } else {
    }
    %c0 = arith.constant 0 : index
    %c0_1 = arith.constant 0 : index
    %3 = vector.load %arg3[%c0, %c0_1] : memref<256x128xbf16, #tpu.memory_space<vmem>>, vector<256x128xbf16>
    %c0_2 = arith.constant 0 : index
    %c0_3 = arith.constant 0 : index
    %4 = vector.load %arg10[%c0_2, %c0_3] : memref<16x128xf32, #tpu.memory_space<vmem>>, vector<16x128xf32>
    %c0_4 = arith.constant 0 : index
    %c0_5 = arith.constant 0 : index
    %5 = vector.load %arg2[%c0_4, %c0_5] : memref<16x256xf32, #tpu.memory_space<vmem>>, vector<16x256xf32>
    %6 = arith.truncf %5 : vector<16x256xf32> to vector<16x256xbf16>
    %cst = arith.constant dense<0.000000e+00> : vector<16x128xf32>
    %7 = tpu.matmul %6, %3, %cst {dimension_numbers = #tpu.dot_dimension_numbers<[1], [0], [0], [1], [0, 0, 1, 1], [], []>} : vector<16x256xbf16>, vector<256x128xbf16>, vector<16x128xf32> -> vector<16x128xf32>
    %8 = arith.addf %4, %7 : vector<16x128xf32>
    %c0_6 = arith.constant 0 : index
    %c0_7 = arith.constant 0 : index
    %9 = vector.load %arg10[%c0_6, %c0_7] : memref<16x128xf32, #tpu.memory_space<vmem>>, vector<16x128xf32>
    tpu.vector_store %arg10[%c0_6, %c0_7], %8 {strides = array<i32>} : memref<16x128xf32, #tpu.memory_space<vmem>>, vector<16x128xf32>,
    %c0_i32_8 = arith.constant 0 : i32
    %10 = arith.cmpi eq, %arg1, %c0_i32_8 : i32
    %11 = arith.extui %10 : i1 to i32
    %c0_i32_9 = arith.constant 0 : i32
    %12 = arith.cmpi ne, %11, %c0_i32_9 : i32
    scf.if %12 {
      %c0_10 = arith.constant 0 : index
      %c0_11 = arith.constant 0 : index
      %13 = vector.load %arg10[%c0_10, %c0_11] : memref<16x128xf32, #tpu.memory_space<vmem>>, vector<16x128xf32>
      %cst_12 = arith.constant 0.000000e+00 : f32
      %14 = vector.broadcast %cst_12 : f32 to vector<16x128xf32>
      %15 = arith.maximumf %13, %14 : vector<16x128xf32>
      %16 = arith.truncf %15 : vector<16x128xf32> to vector<16x128xbf16>
      %c0_13 = arith.constant 0 : index
      %c0_14 = arith.constant 0 : index
      %17 = vector.load %arg5[%c0_13, %c0_14] : memref<128x64xf32, #tpu.memory_space<vmem>>, vector<128x64xf32>
      %18 = arith.truncf %17 : vector<128x64xf32> to vector<128x64xbf16>
      %cst_15 = arith.constant dense<0.000000e+00> : vector<16x64xf32>
      %19 = tpu.matmul %16, %18, %cst_15 {dimension_numbers = #tpu.dot_dimension_numbers<[1], [0], [0], [1], [0, 0, 1, 1], [], []>} : vector<16x128xbf16>, vector<128x64xbf16>, vector<16x64xf32> -> vector<16x64xf32>
      %c0_16 = arith.constant 0 : index
      %c0_17 = arith.constant 0 : index
      %20 = vector.load %arg6[%c0_16, %c0_17] : memref<1x64xf32, #tpu.memory_space<vmem>>, vector<1x64xf32>
      %21 = vector.broadcast %20 : vector<1x64xf32> to vector<16x64xf32>
      %22 = arith.addf %19, %21 : vector<16x64xf32>
      %cst_18 = arith.constant 0.000000e+00 : f32
      %23 = vector.broadcast %cst_18 : f32 to vector<16x64xf32>
      %24 = arith.maximumf %22, %23 : vector<16x64xf32>
      %25 = arith.truncf %24 : vector<16x64xf32> to vector<16x64xbf16>
      %c0_19 = arith.constant 0 : index
      %c0_20 = arith.constant 0 : index
      %26 = vector.load %arg7[%c0_19, %c0_20] : memref<64x128xf32, #tpu.memory_space<vmem>>, vector<64x128xf32>
      %27 = arith.truncf %26 : vector<64x128xf32> to vector<64x128xbf16>
      %cst_21 = arith.constant dense<0.000000e+00> : vector<16x128xf32>
      %28 = tpu.matmul %25, %27, %cst_21 {dimension_numbers = #tpu.dot_dimension_numbers<[1], [0], [0], [1], [0, 0, 1, 1], [], []>} : vector<16x64xbf16>, vector<64x128xbf16>, vector<16x128xf32> -> vector<16x128xf32>
      %c0_22 = arith.constant 0 : index
      %c0_23 = arith.constant 0 : index
      %29 = vector.load %arg8[%c0_22, %c0_23] : memref<1x128xf32, #tpu.memory_space<vmem>>, vector<1x128xf32>
      %30 = vector.broadcast %29 : vector<1x128xf32> to vector<16x128xf32>
      %31 = arith.addf %28, %30 : vector<16x128xf32>
      %32 = arith.negf %31 : vector<16x128xf32>
      %33 = math.exp %32 : vector<16x128xf32>
      %cst_24 = arith.constant 1.000000e+00 : f32
      %34 = vector.broadcast %cst_24 : f32 to vector<16x128xf32>
      %35 = arith.addf %34, %33 : vector<16x128xf32>
      %36 = arith.divf %34, %35 : vector<16x128xf32>
      %c0_25 = arith.constant 0 : index
      %c0_26 = arith.constant 0 : index
      %37 = vector.load %arg9[%c0_25, %c0_26] : memref<16x128xf32, #tpu.memory_space<vmem>>, vector<16x128xf32>
      tpu.vector_store %arg9[%c0_25, %c0_26], %36 {strides = array<i32>} : memref<16x128xf32, #tpu.memory_space<vmem>>, vector<16x128xf32>,
    } else {
    }
    return
  }
  func.func @transform_0(%arg0: i32, %arg1: i32) -> (i32, i32) {
    %c0_i32 = arith.constant 0 : i32
    return %arg0, %arg1 : i32, i32
  }
  func.func @transform_1(%arg0: i32, %arg1: i32) -> (i32, i32) {
    %c0_i32 = arith.constant 0 : i32
    %c0_i32_0 = arith.constant 0 : i32
    return %arg1, %c0_i32 : i32, i32
  }
  func.func @transform_2(%arg0: i32, %arg1: i32) -> (i32, i32) {
    %c0_i32 = arith.constant 0 : i32
    %c0_i32_0 = arith.constant 0 : i32
    %c0_i32_1 = arith.constant 0 : i32
    return %c0_i32, %c0_i32_0 : i32, i32
  }
  func.func @transform_3(%arg0: i32, %arg1: i32) -> (i32, i32) {
    %c0_i32 = arith.constant 0 : i32
    %c0_i32_0 = arith.constant 0 : i32
    %c0_i32_1 = arith.constant 0 : i32
    return %c0_i32, %c0_i32_0 : i32, i32
  }
  func.func @transform_4(%arg0: i32, %arg1: i32) -> (i32, i32) {
    %c0_i32 = arith.constant 0 : i32
    %c0_i32_0 = arith.constant 0 : i32
    %c0_i32_1 = arith.constant 0 : i32
    return %c0_i32, %c0_i32_0 : i32, i32
  }
  func.func @transform_5(%arg0: i32, %arg1: i32) -> (i32, i32) {
    %c0_i32 = arith.constant 0 : i32
    %c0_i32_0 = arith.constant 0 : i32
    %c0_i32_1 = arith.constant 0 : i32
    return %c0_i32, %c0_i32_0 : i32, i32
  }
  func.func @transform_6(%arg0: i32, %arg1: i32) -> (i32, i32) {
    %c0_i32 = arith.constant 0 : i32
    %c0_i32_0 = arith.constant 0 : i32
    %c0_i32_1 = arith.constant 0 : i32
    return %c0_i32, %c0_i32_0 : i32, i32
  }
  func.func @transform_7(%arg0: i32, %arg1: i32) -> (i32, i32) {
    %c0_i32 = arith.constant 0 : i32
    %c0_i32_0 = arith.constant 0 : i32
    return %arg0, %c0_i32 : i32, i32
  }
}

</mosaic_0001>

<bundles_post_ra>
// kernel: tpu_custom_call.1
= control target key start
LH: loop header
LB: loop body
LE: loop exit
PB: predicated region body
PF: predicated region fallthrough
CT: control target
= control target key end

     0   :  { %12 = vsyncpa [#allocation4], 0  ;;  %s777_s0 = inlined_call_operand.hbm [shape: f32[16,256], index: 0, kind: input, shape index: {}]   ;;  %s778_s1 = inlined_call_operand.vmem [shape: bf16[256,128], index: 1, kind: input, shape index: {}]   ;;  %s779_s2 = inlined_call_operand.vmem [shape: f32[1,128], index: 2, kind: input, shape index: {}]   ;;  %s780_s3 = inlined_call_operand.vmem [shape: f32[128,64], index: 3, kind: input, shape index: {}]   ;;  %s781_s4 = inlined_call_operand.vmem [shape: f32[1,64], index: 4, kind: input, shape index: {}]   ;;  %s782_s5 = inlined_call_operand.vmem [shape: f32[64,128], index: 5, kind: input, shape index: {}]   ;;  %s783_s6 = inlined_call_operand.vmem [shape: f32[1,128], index: 6, kind: input, shape index: {}]   ;;  %s784_s7 = inlined_call_operand.hbm [shape: f32[16,128], index: 7, kind: output, shape index: {}]  }
   0x1   :  { %13 = vsyncpa [#allocation5], 0  ;;  %s580_s24 = smov [#allocation3]  }
   0x2   :  { %s19_s25 = sshll.u32 %s580_s24, 4  ;;  %s20_s25 = int_to_ptr.vmem [resolvable:$true] %s19_s25 }
   0x3   :  { %s544_s26 = scalar_lea.vmem %s20_s25, 512  ;;  %p549_p1 = scmp.lt.s32.totalorder %s20_s25, %s20_s25 }
   0x4   :  { %p545_p0 = scmp.ne.s32.totalorder %s20_s25, %s544_s26  ;;  %p550_p2 = scmp.lt.s32.totalorder %s544_s26, %s544_s26 }
   0x6   :  { %p551_p3 = por %p550_p2, %p549_p1 }
   0x8   :  { %p552_p4 = pnand %p551_p3, %p545_p0 }
   0xa   :  { %555 = shalt.err (!%p552_p4)
}
   0xb   :  { %s581_s27 = smov 256   ;;  %s582_s28 = smov 16  }
   0xc   :  { %25 = dma.hbm_to_vmem [thread:$0]  %s777_s0, 512, %s20_s25, [#allocation4], %s581_s27, %s581_s27, %s582_s28  }
   0xd   :  { %576 = dma.done.wait [#allocation4], 512  }
   0xe   :  { %577 = vsyncadd [#allocation4], 4294966784  ;;  %v583_v0 = vmov 0.0   ;;  %v512_v1 = vld [vmem:[%s778_s1 + $0x78] sm:$0xff]   ;;  %v514_v3 = vld [vmem:[%s778_s1 + $0x70] sm:$0xff]   ;;  %vm584_vm0 = vmmov 0  }
   0xf   :  { %472 = vmatprep.subr.bf16.mxu1 %v583_v0  ;;  %v513_v2 = vld [vmem:[%s778_s1 + $0x38] sm:$0xff]   ;;  %436 = vmatprep.subr.bf16.mxu0 %v512_v1  ;;  %v515_v4 = vld [vmem:[%s778_s1 + $0x30] sm:$0xff]   ;;  %v516_v5 = vld [vmem:[%s778_s1 + $0x68] sm:$0xff]   ;;  %vm338_vm1 = vcmask 523264  }
  0x10   :  { %437 = vmatpush3.bf16.msra.mxu0 %v513_v2  ;;  %v517_v6 = vld [vmem:[%s778_s1 + $0x28] sm:$0xff]   ;;  %v518_v7 = vld [vmem:[%s778_s1 + $0x60] sm:$0xff]   ;;  %v520_v9 = vld [vmem:[%s778_s1 + $0x58] sm:$0xff]   ;;  %488 = vmatprep.mubr.msk.bf16.mxu1 %vm584_vm0, %v583_v0 }
  0x11   :  { %438 = vmatprep.subr.bf16.mxu0 %v514_v3  ;;  %v519_v8 = vld [vmem:[%s778_s1 + $0x20] sm:$0xff]   ;;  %v521_v10 = vld [vmem:[%s778_s1 + $0x18] sm:$0xff]   ;;  %v522_v11 = vld [vmem:[%s778_s1 + $0x50] sm:$0xff]  }
  0x12   :  { %v90_v12 = vld [vmem:[#allocation3 + $0x8] sm:$0xff]  ;;  %v92_v13 = vld [vmem:[#allocation3 + $0x18] sm:$0xff]  ;;  %v258_v15 = vld [vmem:[%s780_s3 + $0x70] sm:$0xff] }
  0x13   :  { %v94_v14 = vpack.c.bf16 %v92_v13, %v90_v12  ;;  %v259_v16 = vld [vmem:[%s780_s3 + $0x78] sm:$0xff]  ;;  %v256_v18 = vld [vmem:[%s780_s3 + $0x60] sm:$0xff]  ;;  %v257_v19 = vld [vmem:[%s780_s3 + $0x68] sm:$0xff] }
  0x14   :  { %439 = vmatpush3.bf16.msra.mxu0 %v515_v4  ;;  %v267_v17 = vpack.c.bf16 %v259_v16, %v258_v15  ;;  %v523_v20 = vld [vmem:[%s778_s1 + $0x10] sm:$0xff]   ;;  %v524_v21 = vld [vmem:[%s778_s1 + $0x48] sm:$0xff]   ;;  %v266_v22 = vpack.c.bf16 %v257_v19, %v256_v18  ;;  %v255_v24 = vld [vmem:[%s780_s3 + $0x58] sm:$0xff] }
  0x15   :  { %440 = vmatprep.subr.bf16.mxu0 %v516_v5  ;;  %223 = vmatprep.mubr.bf16.mxu0 %v94_v14  ;;  %v254_v23 = vld [vmem:[%s780_s3 + $0x50] sm:$0xff]  ;;  %v525_v25 = vld [vmem:[%s778_s1 + $0x8] sm:$0xff]   ;;  %v526_v26 = vld [vmem:[%s778_s1 + $0x40] sm:$0xff]  }
  0x16   :  { %473 = vmatpush3.bf16.msra.mxu1 %v267_v17  ;;  %v265_v27 = vpack.c.bf16 %v255_v24, %v254_v23  ;;  %v252_v28 = vld [vmem:[%s780_s3 + $0x40] sm:$0xff]  ;;  %v253_v29 = vld [vmem:[%s780_s3 + $0x48] sm:$0xff]  ;;  %v91_v32 = vld [vmem:[#allocation3 + $0x10] sm:$0xff] }
  0x17   :  { %474 = vmatprep.subr.bf16.mxu1 %v583_v0  ;;  %v527_v30 = vld [vmem:[%s778_s1] sm:$0xff]   ;;  %v264_v33 = vpack.c.bf16 %v253_v29, %v252_v28  ;;  %v250_v35 = vld [vmem:[%s780_s3 + $0x30] sm:$0xff]  ;;  %v251_v36 = vld [vmem:[%s780_s3 + $0x38] sm:$0xff] }
  0x18   :  { %441 = vmatpush3.bf16.msra.mxu0 %v517_v6  ;;  %v89_v31 = vld [vmem:[#allocation3] sm:$0xff]  ;;  %v263_v37 = vpack.c.bf16 %v251_v36, %v250_v35  ;;  %v249_v39 = vld [vmem:[%s780_s3 + $0x28] sm:$0xff]  ;;  %v246_v41 = vld [vmem:[%s780_s3 + $0x10] sm:$0xff] }
  0x19   :  { %442 = vmatprep.subr.bf16.mxu0 %v518_v7  ;;  %v93_v34 = vpack.c.bf16 %v91_v32, %v89_v31  ;;  %v248_v38 = vld [vmem:[%s780_s3 + $0x20] sm:$0xff]  ;;  %v247_v42 = vld [vmem:[%s780_s3 + $0x18] sm:$0xff]  ;;  %v245_v45 = vld [vmem:[%s780_s3 + $0x8] sm:$0xff] }
  0x1a   :  { %475 = vmatpush3.bf16.msra.mxu1 %v266_v22  ;;  %v262_v40 = vpack.c.bf16 %v249_v39, %v248_v38  ;;  %v261_v43 = vpack.c.bf16 %v247_v42, %v246_v41  ;;  %v244_v44 = vld [vmem:[%s780_s3] sm:$0xff]  ;;  %v325_v47 = vld [vmem:[%s782_s5 + $0x30] sm:$0xff]  ;;  %v326_v48 = vld [vmem:[%s782_s5 + $0x38] sm:$0xff] }
  0x1b   :  { %476 = vmatprep.subr.bf16.mxu1 %v583_v0  ;;  %v260_v46 = vpack.c.bf16 %v245_v45, %v244_v44  ;;  %v330_v49 = vpack.c.bf16 %v326_v48, %v325_v47  ;;  %v414_v53 = vld [vmem:[%s779_s2] ss:$0 sm:$0xff]  ;;  %v324_v63 = vld [vmem:[%s782_s5 + $0x28] sm:$0xff]  ;;  %v321_v2 = vld [vmem:[%s782_s5 + $0x10] sm:$0xff] }
  0x1c   :  { %443 = vmatpush3.bf16.msra.mxu0 %v519_v8  ;;  %v323_v62 = vld [vmem:[%s782_s5 + $0x20] sm:$0xff]  ;;  %v322_v3 = vld [vmem:[%s782_s5 + $0x18] sm:$0xff]  ;;  %v320_v6 = vld [vmem:[%s782_s5 + $0x8] sm:$0xff] }
  0x1d   :  { %444 = vmatprep.subr.bf16.mxu0 %v520_v9  ;;  %v329_v1 = vpack.c.bf16 %v324_v63, %v323_v62  ;;  %v328_v4 = vpack.c.bf16 %v322_v3, %v321_v2  ;;  %v319_v5 = vld [vmem:[%s782_s5] sm:$0xff] }
  0x1e   :  { %477 = vmatpush3.bf16.msra.mxu1 %v265_v27  ;;  %v327_v7 = vpack.c.bf16 %v320_v6, %v319_v5  ;;  %v431_v8 = vld [vmem:[%s781_s4] ss:$0 sm:$0xff]  ;;  %s585_s4 = smov [#allocation6]  }
  0x1f   :  { %478 = vmatprep.subr.bf16.mxu1 %v583_v0  ;;  %v432_v17 = vld [vmem:[%s783_s6] ss:$0 sm:$0xff]  ;;  %s402_s5 = sshll.u32 %s585_s4, 4  ;;  %s403_s5 = int_to_ptr.vmem [resolvable:$true] %s402_s5 }
  0x20   :  { %445 = vmatpush3.bf16.msra.mxu0 %v521_v10  ;;  %s556_s6 = scalar_lea.vmem %s403_s5, 256  ;;  %p561_p6 = scmp.lt.s32.totalorder %s403_s5, %s403_s5 }
  0x21   :  { %446 = vmatprep.subr.bf16.mxu0 %v522_v11  ;;  %p557_p5 = scmp.ne.s32.totalorder %s403_s5, %s556_s6  ;;  %p562_p7 = scmp.lt.s32.totalorder %s556_s6, %s556_s6 }
  0x22   :  { %479 = vmatpush3.bf16.msra.mxu1 %v264_v33 }
  0x23   :  { %480 = vmatprep.subr.bf16.mxu1 %v583_v0  ;;  %p563_p8 = por %p562_p7, %p561_p6 }
  0x24   :  { %447 = vmatpush3.bf16.msra.mxu0 %v523_v20 }
  0x25   :  { %448 = vmatprep.subr.bf16.mxu0 %v524_v21  ;;  %p564_p9 = pnand %p563_p8, %p557_p5 }
  0x26   :  { %481 = vmatpush3.bf16.msra.mxu1 %v263_v37 }
  0x27   :  { %482 = vmatprep.subr.bf16.mxu1 %v583_v0 }
  0x28   :  { %449 = vmatpush3.bf16.msra.mxu0 %v525_v25 }
  0x29   :  { %450 = vmatprep.subr.bf16.mxu0 %v526_v26 }
  0x2a   :  { %483 = vmatpush3.bf16.msra.mxu1 %v262_v40 }
  0x2b   :  { %484 = vmatprep.subr.bf16.mxu1 %v583_v0 }
  0x2c   :  { %451 = vmatpush3.bf16.msra.mxu0 %v527_v30 }
  0x2d   :  { %492 = vmatprep.subr.bf16.mxu0 %v583_v0 }
  0x2e   :  { %485 = vmatpush3.bf16.msra.mxu1 %v261_v43 }
  0x2f   :  { %224 = vmatmul.mubr.bf16.vlgmr.msra.gmra.mxu0 %v93_v34  ;;  %486 = vmatprep.subr.bf16.mxu1 %v583_v0 }
  0x30   :  { %500 = vmatprep.mubr.msk.bf16.mxu0 %vm584_vm0, %v583_v0  ;;  %493 = vmatpush3.bf16.msra.mxu0 %v330_v49 }
  0x31   :  { %494 = vmatprep.subr.bf16.mxu0 %v583_v0 }
  0x32   :  { %487 = vmatpush3.bf16.msra.mxu1 %v260_v46 }
  0x34   :  { %495 = vmatpush3.bf16.msra.mxu0 %v329_v1 }
  0x35   :  { %496 = vmatprep.subr.bf16.mxu0 %v583_v0 }
  0x38   :  { %497 = vmatpush3.bf16.msra.mxu0 %v328_v4 }
  0x39   :  { %498 = vmatprep.subr.bf16.mxu0 %v583_v0 }
  0x3c   :  { %499 = vmatpush3.bf16.msra.mxu0 %v327_v7 }
  0xef   :  { %v452_v50 = vpop.f32.mrf.mxu0 }
  0xf1   :  { %v453_v51 = vpop.f32.mrf.mxu0 }
  0xf2   :  { %v454_v52 = vadd.f32 %v453_v51, %v452_v50 }
  0xf3   :  { %v455_v54 = vpop.f32.mrf.mxu0 }
  0xf4   :  { %v232_v56 = vadd.f32 %v454_v52, %v414_v53 }
  0xf5   :  { %v456_v55 = vpop.f32.mrf.mxu0 }
  0xf6   :  { %v457_v57 = vadd.f32 %v456_v55, %v455_v54  ;;  %v241_v59 = vmax.f32 %v232_v56, 0.0 }
  0xf8   :  { %v233_v58 = vadd.f32 %v457_v57, %v414_v53 }
  0xfa   :  { %v242_v60 = vmax.f32 %v233_v58, 0.0 }
  0xfc   :  { %v243_v61 = vpack.c.bf16 %v242_v60, %v241_v59 }
  0xfe   :  { %489 = vmatmul.mubr.bf16.vlgmr.msra.gmra.mxu1 %v243_v61 }
 0x1be   :  { %v309_v9 = vpop.f32.mrf.mxu1 }
 0x1bf   :  { %v310_v11 = vadd.f32 %v431_v8, %v309_v9 }
 0x1c0   :  { %v490_v10 = vpop.f32.mrf.mxu1 }
 0x1c1   :  { %v316_v14 = vmax.f32 %v310_v11, 0.0 }
 0x1c2   :  { %v312_v12 = vpop.f32.mrf.mxu1 }
 0x1c3   :  { %v313_v13 = vadd.f32 %v431_v8, %v312_v12 }
 0x1c4   :  { %v491_v0 = vpop.f32.mrf.mxu1 }
 0x1c5   :  { %v317_v15 = vmax.f32 %v313_v13, 0.0 }
 0x1c7   :  { %v318_v16 = vpack.c.bf16 %v317_v15, %v316_v14 }
 0x1c9   :  { %501 = vmatmul.mubr.msk.bf16.vlgmr.msra.gmra.mxu0 %vm338_vm1, %v318_v16 }
 0x289   :  { %v376_v18 = vpop.f32.mrf.mxu0 }
 0x28a   :  { %v377_v19 = vadd.f32 %v432_v17, %v376_v18 }
 0x28b   :  { %v502_v20 = vpop.f32.mrf.mxu0 }
 0x28c   :  { %v434_v21 = vmul.f32 -1.442695, %v377_v19 }
 0x28d   :  { %v379_v22 = vpop.f32.mrf.mxu0 }
 0x28e   :  { %528 = vpow2.f32 %v434_v21  ;;  %v380_v23 = vadd.f32 %v432_v17, %v379_v22 }
 0x28f   :  { %v503_v24 = vpop.f32.mrf.mxu0 }
 0x290   :  { %v435_v25 = vmul.f32 -1.442695, %v380_v23 }
 0x292   :  { %530 = vpow2.f32 %v435_v25 }
 0x29b   :  { %v529_v26 = vpop.eup %528 }
 0x29c   :  { %v389_v27 = vadd.f32 1.0, %v529_v26 }
 0x29e   :  { %532 = vrcp.f32 %v389_v27 }
 0x29f   :  { %v531_v28 = vpop.eup %530 }
 0x2a0   :  { %v390_v29 = vadd.f32 1.0, %v531_v28 }
 0x2a2   :  { %534 = vrcp.f32 %v390_v29 }
 0x2ab   :  { %v533_v30 = vpop.eup %532 }
 0x2ac   :  { %395 = vst [vmem:[#allocation6] sm:$0xff] %v533_v30 }
 0x2af   :  { %v535_v31 = vpop.eup %534 }
 0x2b0   :  { %396 = vst [vmem:[#allocation6 + $0x8] sm:$0xff] %v535_v31 }
 0x2b1   :  { %567 = shalt.err (!%p564_p9)
}
 0x2b2   :  { %s586_s17 = smov 128   ;;  %s587_s18 = smov 8  }
 0x2b3   :  { %408 = dma.vmem_to_hbm [thread:$0]  %s403_s5, 256, %s784_s7, [#allocation5], %s586_s17, %s586_s17, %s587_s18  }
 0x2b4   :  { %578 = dma.done.wait [#allocation5], 256  }
 0x2b5   :  { %579 = vsyncadd [#allocation5], 4294967040 }
 0x2b6   :  { %412 = vsyncpa [#allocation4], 1 }
 0x2b7   :  { %413 = vsyncpa [#allocation5], 1 }

</bundles_post_ra>
